<compile_context>
chip_gen: v7x
topology: tpu7x:2x2x1
jax: 0.10.0
libtpu: 0.0.40
codegen_flags: <defaults>
</compile_context>

<pallas_src>
import functools

import jax
import jax.numpy as jnp
from jax.experimental import pallas as pl
from jax.experimental.pallas import tpu as pltpu


_LANE = 128
_SUBLANE = 8
_MAX_CHAN_BLOCK = 256   # sublane rows per tile when channels are gridded (multiple of 8)


def _tile_policy():
    """Per-generation (tile byte budget, scoped-VMEM limit) for the tiled path.

    The tiled path keeps 2 input + 2 output double-buffered tiles resident, so
    the steady-state VMEM footprint is ~4x one (sublane-padded) tile.
    """
    try:
        vmem_cap = int(pltpu.get_tpu_info().vmem_capacity_bytes)
    except Exception:
        vmem_cap = None
    if vmem_cap is None:
        # Unknown chip: stay under the tightest default scoped limit
        # (v5e default is 16 MiB -> 4 x 3 MiB = 12 MiB working set).
        return 3 << 20, None
    if vmem_cap <= (96 << 20):
        # v7x-class core (64 MiB physical, 32 MiB default scoped):
        # 4 x 6 MiB = 24 MiB working set leaves headroom under the 32 MiB scope,
        # while 6 MiB tiles keep the 0.35 us step overhead small vs 3.2 TB/s HBM.
        return 6 << 20, 32 << 20
    # v5e / v6e (128 MiB physical VMEM): use 6 MiB tiles and explicitly raise the
    # scoped limit (v5e default is only 16 MiB, v6e default 32 MiB).
    return 6 << 20, 48 << 20


def _pad_tiled_kernel(x_ref, o_ref, *, value, in_time, time_block):
    """One (channel_block, time_block) output tile; three mutually exclusive cases."""
    tj = pl.program_id(1)
    col0 = tj * time_block                      # first output column of this tile

    # Case 1: tile lies entirely inside the input region -> pure lane-dense copy.
    @pl.when(col0 + time_block <= in_time)
    def _():
        o_ref[...] = x_ref[...]

    # Case 2: tile lies entirely in the pad region -> pure lane-dense fill.
    # The input block index is clamped (constant across these steps), so Pallas
    # skips re-fetching input and these tiles are effectively write-only.
    @pl.when(col0 >= in_time)
    def _():
        o_ref[...] = jnp.full(o_ref.shape, value, dtype=o_ref.dtype)

    # Case 3: the single ragged tile containing column `in_time` -> masked select.
    # x_ref lanes >= in_time are undefined (block overhangs the input array);
    # they are ONLY routed through the where-select, never computed on.
    @pl.when(jnp.logical_and(col0 < in_time, col0 + time_block > in_time))
    def _():
        cols = col0 + jax.lax.broadcasted_iota(jnp.int32, o_ref.shape, 1)
        o_ref[...] = jnp.where(
            cols < in_time,
            x_ref[...],
            jnp.full(o_ref.shape, value, dtype=o_ref.dtype),
        )


def _pad_small_kernel(x_ref, o_ref, *, value, in_time, out_time):
    """Small-output fallback (out_t < 128).

    The whole output row fits in a single vreg column, so this path is tiny.
    Two disjoint (copy / fill) stores are kept instead of a single fused store
    because the copy and fill operands have different widths (t vs out_t) and an
    in-kernel minor-dim concatenate/pad has lowering edge cases for packed
    dtypes; the two masked vst streams here touch < 128 lanes total.
    """
    o_ref[:, :in_time] = x_ref[...]
    if out_time > in_time:  # static
        o_ref[:, in_time:] = jnp.full(
            (o_ref.shape[0], out_time - in_time), value, dtype=o_ref.dtype)


def pad(waveform: jax.Array, value: float, size: int) -> jax.Array:
    """Pallas implementation of Pad.forward for a 2-D (channels, time) input."""
    assert waveform.ndim == 2, "kernel implemented for (channels, time) layout"
    c, t = waveform.shape
    # NOTE: faithful to the module, the pad amount uses max over ALL dims.
    pad_amount = size - max(waveform.shape)
    if pad_amount < 0:
        # TODO(synk): negative pad (truncation when size < max(shape)) is not implemented.
        raise ValueError("negative padding (truncation) not supported")
    out_t = t + pad_amount
    dtype = waveform.dtype
    itemsize = jnp.dtype(dtype).itemsize
    out_shape = jax.ShapeDtypeStruct((c, out_t), dtype)

    cost = pl.CostEstimate(
        flops=0, transcendentals=0,
        bytes_accessed=(c * t + c * out_t) * itemsize)

    cb = c if c <= _MAX_CHAN_BLOCK else _MAX_CHAN_BLOCK   # full-extent or multiple of 8
    grid_c = pl.cdiv(c, cb)

    if out_t >= _LANE:
        # Tiled, pipelined path: lane-dense time blocks, parallel 2-D grid.
        tile_budget, vmem_limit = _tile_policy()

        # Sublane-padded rows a (cb, bt) tile actually occupies in VMEM.
        padded_cb = max(_SUBLANE, ((cb + _SUBLANE - 1) // _SUBLANE) * _SUBLANE)

        # (1) Byte budget (biggest lever): per-grid-step DMA must be MiB-scale
        #     so the ~0.35 us step overhead is amortized.
        bt = tile_budget // (padded_cb * itemsize)
        bt = max(_LANE, (bt // _LANE) * _LANE)

        # (2) Keep grid_t >= min(4, cdiv(out_t, 128)) so the time axis can still
        #     shard across both v7x TensorCores and overlap in/out DMAs.
        target_grid_t = min(4, pl.cdiv(out_t, _LANE))
        bt_cap = max(_LANE, ((out_t // target_grid_t) // _LANE) * _LANE)
        bt = min(bt, bt_cap)

        grid_t = pl.cdiv(out_t, bt)
        last_in_block = max(pl.cdiv(t, bt) - 1, 0)

        compiler_kwargs = dict(dimension_semantics=("parallel", "parallel"))
        if vmem_limit is not None:
            compiler_kwargs["vmem_limit_bytes"] = int(vmem_limit)

        kernel = functools.partial(
            _pad_tiled_kernel, value=value, in_time=t, time_block=bt)
        return pl.pallas_call(
            kernel,
            out_shape=out_shape,
            grid=(grid_c, grid_t),
            in_specs=[pl.BlockSpec(
                (cb, bt),
                lambda ci, tj: (ci, jnp.minimum(tj, last_in_block)))],
            # Default 2-deep pipelining; pl.Buffered(3) on out_specs is a possible
            # sweep if xprof shows exposed output DMA (costs one more tile of VMEM).
            out_specs=pl.BlockSpec((cb, bt), lambda ci, tj: (ci, tj)),
            compiler_params=pltpu.CompilerParams(**compiler_kwargs),
            cost_estimate=cost,
        )(waveform)

    # Small-output fallback: full-extent time blocks (satisfies the (8,128) rule
    # because block dims equal the array dims), disjoint copy + fill stores.
    kernel = functools.partial(
        _pad_small_kernel, value=value, in_time=t, out_time=out_t)
    return pl.pallas_call(
        kernel,
        out_shape=out_shape,
        grid=(grid_c,),
        in_specs=[pl.BlockSpec((cb, t), lambda ci: (ci, 0))],
        out_specs=pl.BlockSpec((cb, out_t), lambda ci: (ci, 0)),
        compiler_params=pltpu.CompilerParams(
            dimension_semantics=("parallel",)),
        cost_estimate=cost,
    )(waveform)


if __name__ == "__main__":
    key = jax.random.PRNGKey(0)
    k1, k2, k3 = jax.random.split(key, 3)

    def _check(x, value, size, tag):
        out = jax.block_until_ready(pad(x, value, size))
        ref = jnp.pad(x, ((0, 0), (0, size - max(x.shape))),
                      mode="constant", constant_values=value)
        assert out.shape == ref.shape, (tag, out.shape, ref.shape)
        assert out.dtype == ref.dtype, (tag, out.dtype, ref.dtype)
        assert bool(jnp.allclose(out, ref)), f"{tag}: mismatch vs reference"

    # Test 1: the module's small example (4 channels, 24 samples -> size 64); small path.
    x1 = jax.random.normal(k1, (4, 24), dtype=jnp.float32)
    _check(x1, 0.5, 64, "small")

    # Test 2: tiled path with pure-copy, ragged-boundary and pure-fill tiles.
    x2 = jax.random.normal(k2, (4, 2000), dtype=jnp.float32)
    _check(x2, -1.25, 3000, "tiled")

    # Test 3: mono waveform (c=1), tiled path, pad-only (write-only) tiles.
    x3 = jax.random.normal(k3, (1, 4096), dtype=jnp.float32)
    _check(x3, 0.25, 8192, "mono")

    print("KERNEL_OK")
</pallas_src>

<mosaic_0001>
module attributes {stable_mosaic.version = 11 : i64} {
  func.func @_pad_small_kernel(%arg0: i32, %arg1: memref<4x24xf32, #tpu.memory_space<vmem>>, %arg2: memref<4x64xf32, #tpu.memory_space<vmem>>) attributes {dimension_semantics = [#tpu.dimension_semantics<parallel>], iteration_bounds = array<i64: 1>, scalar_prefetch = 0 : i64, scratch_operands = 0 : i64, tpu.core_type = #tpu.core_type<tc>, window_params = [{transform_indices = @transform_0, window_bounds = array<i64: 4, 24>}, {transform_indices = @transform_1, window_bounds = array<i64: 4, 64>}]} {
    %c0 = arith.constant 0 : index
    %c0_0 = arith.constant 0 : index
    %0 = vector.load %arg1[%c0, %c0_0] : memref<4x24xf32, #tpu.memory_space<vmem>>, vector<4x24xf32>
    %c0_1 = arith.constant 0 : index
    %c0_2 = arith.constant 0 : index
    %1 = vector.load %arg2[%c0_1, %c0_2] : memref<4x64xf32, #tpu.memory_space<vmem>>, vector<4x24xf32>
    tpu.vector_store %arg2[%c0_1, %c0_2], %0 {strides = array<i32>} : memref<4x64xf32, #tpu.memory_space<vmem>>, vector<4x24xf32>,
    %cst = arith.constant 5.000000e-01 : f32
    %2 = vector.broadcast %cst : f32 to vector<4x40xf32>
    %c0_3 = arith.constant 0 : index
    %c24 = arith.constant 24 : index
    %3 = vector.load %arg2[%c0_3, %c24] : memref<4x64xf32, #tpu.memory_space<vmem>>, vector<4x40xf32>
    tpu.vector_store %arg2[%c0_3, %c24], %2 {strides = array<i32>} : memref<4x64xf32, #tpu.memory_space<vmem>>, vector<4x40xf32>,
    return
  }
  func.func @transform_0(%arg0: i32) -> (i32, i32) {
    %c0_i32 = arith.constant 0 : i32
    %c0_i32_0 = arith.constant 0 : i32
    return %arg0, %c0_i32 : i32, i32
  }
  func.func @transform_1(%arg0: i32) -> (i32, i32) {
    %c0_i32 = arith.constant 0 : i32
    %c0_i32_0 = arith.constant 0 : i32
    return %arg0, %c0_i32 : i32, i32
  }
}

</mosaic_0001>

<bundles_post_ra>
// kernel: tpu_custom_call.1
= control target key start
LH: loop header
LB: loop body
LE: loop exit
PB: predicated region body
PF: predicated region fallthrough
CT: control target
= control target key end

     0   :  { %6 = vsyncpa [#allocation3], 0  ;;  %s129_s0 = inlined_call_operand.hbm [shape: f32[4,24], index: 0, kind: input, shape index: {}]   ;;  %s130_s1 = inlined_call_operand.hbm [shape: f32[4,64], index: 1, kind: output, shape index: {}]  }
   0x1   :  { %7 = vsyncpa [#allocation4], 0  ;;  %s92_s6 = smov [#allocation2]   ;;  %s44_s10 = scalar_lea.hbm %s129_s0, 64 }
   0x2   :  { %s14_s7 = sshll.u32 %s92_s6, 4  ;;  %p45_p0 = scmp.ne.s32.totalorder %s129_s0, %s44_s10  ;;  %s15_s7 = int_to_ptr.vmem [resolvable:$true] %s14_s7 }
   0x3   :  { %p48_p1 = scmp.lt.u32.totalorder %s44_s10, %s129_s0 }
   0x5   :  { %p50_p2 = pnand %p48_p1, %p45_p0 }
   0x7   :  { %53 = shalt.err (!%p50_p2)
}
   0x8   :  { %s54_s15 = scalar_lea.vmem %s15_s7, 64  ;;  %p59_p4 = scmp.lt.s32.totalorder %s15_s7, %s15_s7 }
   0x9   :  { %p55_p3 = scmp.ne.s32.totalorder %s15_s7, %s54_s15  ;;  %p60_p5 = scmp.lt.s32.totalorder %s54_s15, %s54_s15 }
   0xb   :  { %p61_p6 = por %p60_p5, %p59_p4 }
   0xd   :  { %p62_p7 = pnand %p61_p6, %p55_p3 }
   0xf   :  { %65 = shalt.err (!%p62_p7)
}
  0x10   :  { %17 = dma.hbm_to_vmem [thread:$0]  %s129_s0, 64, %s15_s7, [#allocation3]  }
  0x11   :  { %88 = dma.done.wait [#allocation3], 64  }
  0x12   :  { %89 = vsyncadd [#allocation3], 4294967232  ;;  %s93_s18 = smov [#allocation5]   ;;  %vm22_vm0 = vcmask 191488   ;;  %vm24_vm1 = vcmask 519360   ;;  %v94_v1 = vmov 0.5  }
  0x13   :  { %s32_s19 = sshll.u32 %s93_s18, 4  ;;  %v21_v0 = vld [vmem:[#allocation2] sm:$0xf]  ;;  %s33_s19 = int_to_ptr.vmem [resolvable:$true] %s32_s19 }
  0x14   :  { %23 = vst.msk [vmem:[#allocation5] sm:$0xf] %vm22_vm0, %v21_v0  ;;  %s66_s20 = scalar_lea.vmem %s33_s19, 64  ;;  %p71_p9 = scmp.lt.s32.totalorder %s33_s19, %s33_s19 }
  0x15   :  { %25 = vst.msk [vmem:[#allocation5] sm:$0xf] %vm24_vm1, %v94_v1  ;;  %p67_p8 = scmp.ne.s32.totalorder %s33_s19, %s66_s20  ;;  %p72_p10 = scmp.lt.s32.totalorder %s66_s20, %s66_s20 }
  0x17   :  { %p73_p11 = por %p72_p10, %p71_p9 }
  0x19   :  { %p74_p12 = pnand %p73_p11, %p67_p8 }
  0x1b   :  { %77 = shalt.err (!%p74_p12)
}
  0x1c   :  { %s78_s22 = scalar_lea.hbm %s130_s1, 64 }
  0x1d   :  { %p79_p13 = scmp.ne.s32.totalorder %s130_s1, %s78_s22  ;;  %p82_p0 = scmp.lt.u32.totalorder %s78_s22, %s130_s1 }
  0x1f   :  { %p84_p1 = pnand %p82_p0, %p79_p13 }
  0x21   :  { %87 = shalt.err (!%p84_p1)
}
  0x22   :  { %35 = dma.vmem_to_hbm [thread:$0]  %s33_s19, 64, %s130_s1, [#allocation4]  }
  0x23   :  { %90 = dma.done.wait [#allocation4], 64  }
  0x24   :  { %91 = vsyncadd [#allocation4], 4294967232 }
  0x25   :  { %39 = vsyncpa [#allocation3], 1 }
  0x26   :  { %40 = vsyncpa [#allocation4], 1 }

</bundles_post_ra>
